<compile_context>
chip_gen: v5e
topology: v5e:2x2
jax: 0.10.0
libtpu: 0.0.40
codegen_flags: <defaults>
</compile_context>

<pallas_src>
import math

import jax
import jax.numpy as jnp
from jax.experimental import pallas as pl
from jax.experimental.pallas import tpu as pltpu

LANE = 128
SUBLANE = 8


def _round_up(x, m):
    return (x + m - 1) // m * m


def _row_tile_cap():
    """Row-tile cap: 256 on v6e/v7x (2x256^2 MXU), 128 on v5e and older."""
    try:
        kind = jax.devices()[0].device_kind.lower()
    except Exception:
        return 128
    return 256 if ("v6" in kind or "v7" in kind) else 128


def _vmem_limit_bytes(tm, d_in, h1, h2, k_pad):
    w_bytes = 2 * (d_in * h1 + h1 * h2 + h2 * k_pad)        # bf16 weights
    b_bytes = 4 * (h1 + h2 + k_pad)                          # f32 biases
    x_bytes = 2 * tm * d_in * 4                              # double-buffered f32 x tile
    o_bytes = 2 * tm * k_pad * 4                             # double-buffered out tile
    act_bytes = tm * (h1 + h2) * 4                           # intermediates
    est = 2 * (w_bytes + b_bytes) + x_bytes + o_bytes + act_bytes
    return min(int(est * 1.5) + (4 << 20), 96 << 20)


def _mlp(x, w1, b1, w2, b2, w3, b3):
    """ReLU(ReLU(x@W1+b1)@W2+b2)@W3+b3.
    bf16 MXU operands, f32 accumulation, f32 elementwise (v5e has no bf16 VPU)."""
    h = jnp.dot(x.astype(jnp.bfloat16), w1, preferred_element_type=jnp.float32) + b1
    h = jnp.maximum(h, 0.0)
    h = jnp.dot(h.astype(jnp.bfloat16), w2, preferred_element_type=jnp.float32) + b2
    h = jnp.maximum(h, 0.0)
    return jnp.dot(h.astype(jnp.bfloat16), w3, preferred_element_type=jnp.float32) + b3


def _pair_kernel(src_ref, tgt_ref, w1_ref, b1_ref, w2_ref, b2_ref, w3_ref, b3_ref,
                 o_src_ref, o_tgt_ref):
    """Small-batch fast path: source/target kept as separate refs so the wrapper
    never materializes a concatenated or zero-padded feature copy in HBM."""
    w1 = w1_ref[...]
    b1 = b1_ref[...]
    w2 = w2_ref[...]
    b2 = b2_ref[...]
    w3 = w3_ref[...]
    b3 = b3_ref[...]
    o_src_ref[...] = _mlp(src_ref[...], w1, b1, w2, b2, w3, b3)
    o_tgt_ref[...] = _mlp(tgt_ref[...], w1, b1, w2, b2, w3, b3)


def _tiled_kernel(x_ref, w1_ref, b1_ref, w2_ref, b2_ref, w3_ref, b3_ref, o_ref):
    """Row-tiled path for large batches (weights stay resident across the grid)."""
    o_ref[...] = _mlp(x_ref[...], w1_ref[...], b1_ref[...], w2_ref[...], b2_ref[...],
                      w3_ref[...], b3_ref[...])


def prepare_params(params):
    """One-time conversion of f32 module params to kernel-ready form: bf16 weights
    (halves weight DMA + resident VMEM), f32 biases, final layer zero-padded to
    128 lanes so all output stores are full-lane vst."""
    w1, b1 = params["w1"], params["b1"]
    w2, b2 = params["w2"], params["b2"]
    w3, b3 = params["w3"], params["b3"]
    k = w3.shape[1]
    k_pad = _round_up(k, LANE)
    w3p = jnp.zeros((w3.shape[0], k_pad), jnp.bfloat16).at[:, :k].set(
        w3.astype(jnp.bfloat16))
    b3p = jnp.zeros((1, k_pad), jnp.float32).at[:, :k].set(b3.astype(jnp.float32))
    return dict(w1=w1.astype(jnp.bfloat16), b1=b1.astype(jnp.float32),
                w2=w2.astype(jnp.bfloat16), b2=b2.astype(jnp.float32),
                w3=w3p, b3=b3p, k=k)


def discriminator_forward(source_feature, target_feature, kparams, *, lambda_=1.0):
    """Forward pass of Discriminator (ReverseGrad is identity in forward).
    TODO(synk): for training, wrap with jax.custom_vjp that negates/scales the
    gradient by lambda_ (gradient reversal is backward-only)."""
    del lambda_
    w1, b1 = kparams["w1"], kparams["b1"]
    w2, b2 = kparams["w2"], kparams["b2"]
    w3, b3 = kparams["w3"], kparams["b3"]
    k = kparams["k"]
    d_in, h1 = w1.shape
    h2 = w2.shape[1]
    k_pad = w3.shape[1]

    ns = source_feature.shape[0]
    nt = target_feature.shape[0]
    n = ns + nt
    cap = _row_tile_cap()
    fixed = lambda i: (0, 0)

    # ---- Fast path: whole batch in a single kernel invocation, no concat/pad. ----
    if n <= cap:
        out_src, out_tgt = pl.pallas_call(
            _pair_kernel,
            out_shape=(jax.ShapeDtypeStruct((ns, k_pad), jnp.float32),
                       jax.ShapeDtypeStruct((nt, k_pad), jnp.float32)),
            grid=(1,),
            in_specs=[
                pl.BlockSpec((ns, d_in), fixed),
                pl.BlockSpec((nt, d_in), fixed),
                pl.BlockSpec((d_in, h1), fixed),
                pl.BlockSpec((1, h1), fixed),
                pl.BlockSpec((h1, h2), fixed),
                pl.BlockSpec((1, h2), fixed),
                pl.BlockSpec((h2, k_pad), fixed),
                pl.BlockSpec((1, k_pad), fixed),
            ],
            out_specs=(pl.BlockSpec((ns, k_pad), fixed),
                       pl.BlockSpec((nt, k_pad), fixed)),
        )(source_feature, target_feature, w1, b1, w2, b2, w3, b3)
        # Concatenating the tiny (N, K) logits is negligible vs concatenating inputs.
        return jnp.concatenate([out_src[:, :k], out_tgt[:, :k]], axis=0)

    # ---- Tiled path: n > cap -> grid length >= 2 (uses both v7x TensorCores). ----
    tm = cap
    n_pad = _round_up(n, tm)
    parts = [source_feature, target_feature]
    if n_pad != n:                      # fuse pad + concat into a single op
        parts.append(jnp.zeros((n_pad - n, d_in), source_feature.dtype))
    feats = jnp.concatenate(parts, axis=0)

    def call(buffered):
        wkw = dict(pipeline_mode=pl.Buffered(1)) if buffered else {}
        return pl.pallas_call(
            _tiled_kernel,
            out_shape=jax.ShapeDtypeStruct((n_pad, k_pad), jnp.float32),
            grid=(n_pad // tm,),
            in_specs=[
                pl.BlockSpec((tm, d_in), lambda i: (i, 0)),      # x rows, tiled
                pl.BlockSpec((d_in, h1), fixed, **wkw),          # weights resident
                pl.BlockSpec((1, h1), fixed, **wkw),
                pl.BlockSpec((h1, h2), fixed, **wkw),
                pl.BlockSpec((1, h2), fixed, **wkw),
                pl.BlockSpec((h2, k_pad), fixed, **wkw),
                pl.BlockSpec((1, k_pad), fixed, **wkw),
            ],
            out_specs=pl.BlockSpec((tm, k_pad), lambda i: (i, 0)),
            compiler_params=pltpu.CompilerParams(
                dimension_semantics=("parallel",),
                vmem_limit_bytes=_vmem_limit_bytes(tm, d_in, h1, h2, k_pad)),
        )(feats, w1, b1, w2, b2, w3, b3)

    try:
        out = call(buffered=True)       # single-buffer the constant weight blocks
    except Exception:
        out = call(buffered=False)      # fallback if Buffered(1) is not supported
    return out[:n, :k]


def init_params(key, regions, regional_temporal_size, global_temporal_size,
                domain_classes, hidden_size1, hidden_size2):
    """Mirror Discriminator._init_weights; weights stored transposed (x @ W), f32."""
    d_in = global_temporal_size + regions * regional_temporal_size
    k1, k2, k3 = jax.random.split(key, 3)

    # Layer 0: orthogonal(gain=1.414), bias 0.01.  PyTorch weight is (out, in).
    w1 = jax.nn.initializers.orthogonal(scale=1.414)(
        k1, (hidden_size1, d_in), jnp.float32).T
    b1 = jnp.full((1, hidden_size1), 0.01, jnp.float32)

    # Layer 2: kaiming_normal(fan_out, relu) -> std = sqrt(2 / out), bias 0.1.
    std2 = math.sqrt(2.0 / hidden_size2)
    w2 = (std2 * jax.random.normal(k2, (hidden_size2, hidden_size1), jnp.float32)).T
    b2 = jnp.full((1, hidden_size2), 0.1, jnp.float32)

    # Layer 4: xavier_normal(gain = calculate_gain('sigmoid')/2 = 0.5), bias -0.1.
    std3 = 0.5 * math.sqrt(2.0 / (hidden_size2 + domain_classes))
    w3 = (std3 * jax.random.normal(k3, (domain_classes, hidden_size2), jnp.float32)).T
    b3 = jnp.full((1, domain_classes), -0.1, jnp.float32)

    return dict(w1=w1, b1=b1, w2=w2, b2=b2, w3=w3, b3=b3)


def ref_forward(source_feature, target_feature, p):
    """Pure-JAX reference with the same bf16-operand / f32-accumulate semantics."""
    x = jnp.concatenate([source_feature, target_feature], axis=0)

    def bdot(a, w):
        return jnp.dot(a.astype(jnp.bfloat16), w.astype(jnp.bfloat16),
                       preferred_element_type=jnp.float32)

    h1 = jnp.maximum(bdot(x, p["w1"]) + p["b1"], 0.0)
    h2 = jnp.maximum(bdot(h1, p["w2"]) + p["b2"], 0.0)
    return bdot(h2, p["w3"]) + p["b3"]


if __name__ == "__main__":
    # Small, module-consistent shapes (scaled-down Discriminator defaults).
    regions = 4
    regional_temporal_size = 24
    global_temporal_size = 32          # feature dim = 32 + 4*24 = 128
    domain_classes = 2
    hidden_size1 = 128                 # scaled down from 512
    hidden_size2 = 128                 # module default

    key = jax.random.PRNGKey(0)
    ks, kt, kp, ks2, kt2 = jax.random.split(key, 5)
    d_in = global_temporal_size + regions * regional_temporal_size

    params = init_params(kp, regions, regional_temporal_size, global_temporal_size,
                         domain_classes, hidden_size1, hidden_size2)
    kparams = prepare_params(params)

    # --- Test 1: tiny batch -> fast path (no wrapper concat/pad, single step). ---
    B = 2
    src = jax.random.normal(ks, (B, d_in), jnp.float32)
    tgt = jax.random.normal(kt, (B, d_in), jnp.float32)
    out = jax.block_until_ready(discriminator_forward(src, tgt, kparams))
    ref = jax.block_until_ready(ref_forward(src, tgt, params))
    assert out.shape == (2 * B, domain_classes), out.shape
    err1 = float(jnp.max(jnp.abs(out - ref)))
    assert jnp.allclose(out, ref, atol=2e-3, rtol=2e-3), err1

    # --- Test 2: large, unequal batches -> row-tiled path (grid >= 2). ---
    Bs, Bt = 160, 144
    src2 = jax.random.normal(ks2, (Bs, d_in), jnp.float32)
    tgt2 = jax.random.normal(kt2, (Bt, d_in), jnp.float32)
    out2 = jax.block_until_ready(discriminator_forward(src2, tgt2, kparams))
    ref2 = jax.block_until_ready(ref_forward(src2, tgt2, params))
    assert out2.shape == (Bs + Bt, domain_classes), out2.shape
    err2 = float(jnp.max(jnp.abs(out2 - ref2)))
    assert jnp.allclose(out2, ref2, atol=2e-3, rtol=2e-3), err2

    print("KERNEL_OK")
</pallas_src>

<mosaic_0001>
module attributes {stable_mosaic.version = 11 : i64} {
  func.func @_pair_kernel(%arg0: i32, %arg1: memref<2x128xf32, #tpu.memory_space<vmem>>, %arg2: memref<2x128xf32, #tpu.memory_space<vmem>>, %arg3: memref<128x128xbf16, #tpu.memory_space<vmem>>, %arg4: memref<1x128xf32, #tpu.memory_space<vmem>>, %arg5: memref<128x128xbf16, #tpu.memory_space<vmem>>, %arg6: memref<1x128xf32, #tpu.memory_space<vmem>>, %arg7: memref<128x128xbf16, #tpu.memory_space<vmem>>, %arg8: memref<1x128xf32, #tpu.memory_space<vmem>>, %arg9: memref<2x128xf32, #tpu.memory_space<vmem>>, %arg10: memref<2x128xf32, #tpu.memory_space<vmem>>) attributes {dimension_semantics = [#tpu.dimension_semantics<arbitrary>], iteration_bounds = array<i64: 1>, scalar_prefetch = 0 : i64, scratch_operands = 0 : i64, tpu.core_type = #tpu.core_type<tc>, window_params = [{pipeline_mode = #tpu.pipeline_mode<synchronous>, transform_indices = @transform_0, window_bounds = array<i64: 2, 128>}, {pipeline_mode = #tpu.pipeline_mode<synchronous>, transform_indices = @transform_1, window_bounds = array<i64: 2, 128>}, {pipeline_mode = #tpu.pipeline_mode<synchronous>, transform_indices = @transform_2, window_bounds = array<i64: 128, 128>}, {pipeline_mode = #tpu.pipeline_mode<synchronous>, transform_indices = @transform_3, window_bounds = array<i64: 1, 128>}, {pipeline_mode = #tpu.pipeline_mode<synchronous>, transform_indices = @transform_4, window_bounds = array<i64: 128, 128>}, {pipeline_mode = #tpu.pipeline_mode<synchronous>, transform_indices = @transform_5, window_bounds = array<i64: 1, 128>}, {pipeline_mode = #tpu.pipeline_mode<synchronous>, transform_indices = @transform_6, window_bounds = array<i64: 128, 128>}, {pipeline_mode = #tpu.pipeline_mode<synchronous>, transform_indices = @transform_7, window_bounds = array<i64: 1, 128>}, {pipeline_mode = #tpu.pipeline_mode<synchronous>, transform_indices = @transform_8, window_bounds = array<i64: 2, 128>}, {pipeline_mode = #tpu.pipeline_mode<synchronous>, transform_indices = @transform_9, window_bounds = array<i64: 2, 128>}]} {
    %c0 = arith.constant 0 : index
    %c0_0 = arith.constant 0 : index
    %0 = vector.load %arg3[%c0, %c0_0] : memref<128x128xbf16, #tpu.memory_space<vmem>>, vector<128x128xbf16>
    %c0_1 = arith.constant 0 : index
    %c0_2 = arith.constant 0 : index
    %1 = vector.load %arg4[%c0_1, %c0_2] : memref<1x128xf32, #tpu.memory_space<vmem>>, vector<1x128xf32>
    %c0_3 = arith.constant 0 : index
    %c0_4 = arith.constant 0 : index
    %2 = vector.load %arg5[%c0_3, %c0_4] : memref<128x128xbf16, #tpu.memory_space<vmem>>, vector<128x128xbf16>
    %c0_5 = arith.constant 0 : index
    %c0_6 = arith.constant 0 : index
    %3 = vector.load %arg6[%c0_5, %c0_6] : memref<1x128xf32, #tpu.memory_space<vmem>>, vector<1x128xf32>
    %c0_7 = arith.constant 0 : index
    %c0_8 = arith.constant 0 : index
    %4 = vector.load %arg7[%c0_7, %c0_8] : memref<128x128xbf16, #tpu.memory_space<vmem>>, vector<128x128xbf16>
    %c0_9 = arith.constant 0 : index
    %c0_10 = arith.constant 0 : index
    %5 = vector.load %arg8[%c0_9, %c0_10] : memref<1x128xf32, #tpu.memory_space<vmem>>, vector<1x128xf32>
    %c0_11 = arith.constant 0 : index
    %c0_12 = arith.constant 0 : index
    %6 = vector.load %arg1[%c0_11, %c0_12] : memref<2x128xf32, #tpu.memory_space<vmem>>, vector<2x128xf32>
    %7 = arith.truncf %6 : vector<2x128xf32> to vector<2x128xbf16>
    %cst = arith.constant dense<0.000000e+00> : vector<2x128xf32>
    %8 = tpu.matmul %7, %0, %cst {dimension_numbers = #tpu.dot_dimension_numbers<[1], [0], [0], [1], [0, 0, 1, 1], [], []>} : vector<2x128xbf16>, vector<128x128xbf16>, vector<2x128xf32> -> vector<2x128xf32>
    %9 = vector.broadcast %1 : vector<1x128xf32> to vector<2x128xf32>
    %10 = arith.addf %8, %9 : vector<2x128xf32>
    %cst_13 = arith.constant 0.000000e+00 : f32
    %11 = vector.broadcast %cst_13 : f32 to vector<2x128xf32>
    %12 = arith.maximumf %10, %11 : vector<2x128xf32>
    %13 = arith.truncf %12 : vector<2x128xf32> to vector<2x128xbf16>
    %cst_14 = arith.constant dense<0.000000e+00> : vector<2x128xf32>
    %14 = tpu.matmul %13, %2, %cst_14 {dimension_numbers = #tpu.dot_dimension_numbers<[1], [0], [0], [1], [0, 0, 1, 1], [], []>} : vector<2x128xbf16>, vector<128x128xbf16>, vector<2x128xf32> -> vector<2x128xf32>
    %15 = vector.broadcast %3 : vector<1x128xf32> to vector<2x128xf32>
    %16 = arith.addf %14, %15 : vector<2x128xf32>
    %cst_15 = arith.constant 0.000000e+00 : f32
    %17 = vector.broadcast %cst_15 : f32 to vector<2x128xf32>
    %18 = arith.maximumf %16, %17 : vector<2x128xf32>
    %19 = arith.truncf %18 : vector<2x128xf32> to vector<2x128xbf16>
    %cst_16 = arith.constant dense<0.000000e+00> : vector<2x128xf32>
    %20 = tpu.matmul %19, %4, %cst_16 {dimension_numbers = #tpu.dot_dimension_numbers<[1], [0], [0], [1], [0, 0, 1, 1], [], []>} : vector<2x128xbf16>, vector<128x128xbf16>, vector<2x128xf32> -> vector<2x128xf32>
    %21 = vector.broadcast %5 : vector<1x128xf32> to vector<2x128xf32>
    %22 = arith.addf %20, %21 : vector<2x128xf32>
    %c0_17 = arith.constant 0 : index
    %c0_18 = arith.constant 0 : index
    %23 = vector.load %arg9[%c0_17, %c0_18] : memref<2x128xf32, #tpu.memory_space<vmem>>, vector<2x128xf32>
    tpu.vector_store %arg9[%c0_17, %c0_18], %22 {strides = array<i32>} : memref<2x128xf32, #tpu.memory_space<vmem>>, vector<2x128xf32>,
    %c0_19 = arith.constant 0 : index
    %c0_20 = arith.constant 0 : index
    %24 = vector.load %arg2[%c0_19, %c0_20] : memref<2x128xf32, #tpu.memory_space<vmem>>, vector<2x128xf32>
    %25 = arith.truncf %24 : vector<2x128xf32> to vector<2x128xbf16>
    %cst_21 = arith.constant dense<0.000000e+00> : vector<2x128xf32>
    %26 = tpu.matmul %25, %0, %cst_21 {dimension_numbers = #tpu.dot_dimension_numbers<[1], [0], [0], [1], [0, 0, 1, 1], [], []>} : vector<2x128xbf16>, vector<128x128xbf16>, vector<2x128xf32> -> vector<2x128xf32>
    %27 = vector.broadcast %1 : vector<1x128xf32> to vector<2x128xf32>
    %28 = arith.addf %26, %27 : vector<2x128xf32>
    %cst_22 = arith.constant 0.000000e+00 : f32
    %29 = vector.broadcast %cst_22 : f32 to vector<2x128xf32>
    %30 = arith.maximumf %28, %29 : vector<2x128xf32>
    %31 = arith.truncf %30 : vector<2x128xf32> to vector<2x128xbf16>
    %cst_23 = arith.constant dense<0.000000e+00> : vector<2x128xf32>
    %32 = tpu.matmul %31, %2, %cst_23 {dimension_numbers = #tpu.dot_dimension_numbers<[1], [0], [0], [1], [0, 0, 1, 1], [], []>} : vector<2x128xbf16>, vector<128x128xbf16>, vector<2x128xf32> -> vector<2x128xf32>
    %33 = vector.broadcast %3 : vector<1x128xf32> to vector<2x128xf32>
    %34 = arith.addf %32, %33 : vector<2x128xf32>
    %cst_24 = arith.constant 0.000000e+00 : f32
    %35 = vector.broadcast %cst_24 : f32 to vector<2x128xf32>
    %36 = arith.maximumf %34, %35 : vector<2x128xf32>
    %37 = arith.truncf %36 : vector<2x128xf32> to vector<2x128xbf16>
    %cst_25 = arith.constant dense<0.000000e+00> : vector<2x128xf32>
    %38 = tpu.matmul %37, %4, %cst_25 {dimension_numbers = #tpu.dot_dimension_numbers<[1], [0], [0], [1], [0, 0, 1, 1], [], []>} : vector<2x128xbf16>, vector<128x128xbf16>, vector<2x128xf32> -> vector<2x128xf32>
    %39 = vector.broadcast %5 : vector<1x128xf32> to vector<2x128xf32>
    %40 = arith.addf %38, %39 : vector<2x128xf32>
    %c0_26 = arith.constant 0 : index
    %c0_27 = arith.constant 0 : index
    %41 = vector.load %arg10[%c0_26, %c0_27] : memref<2x128xf32, #tpu.memory_space<vmem>>, vector<2x128xf32>
    tpu.vector_store %arg10[%c0_26, %c0_27], %40 {strides = array<i32>} : memref<2x128xf32, #tpu.memory_space<vmem>>, vector<2x128xf32>,
    return
  }
  func.func @transform_0(%arg0: i32) -> (i32, i32) {
    %c0_i32 = arith.constant 0 : i32
    %c0_i32_0 = arith.constant 0 : i32
    %c0_i32_1 = arith.constant 0 : i32
    return %c0_i32, %c0_i32_0 : i32, i32
  }
  func.func @transform_1(%arg0: i32) -> (i32, i32) {
    %c0_i32 = arith.constant 0 : i32
    %c0_i32_0 = arith.constant 0 : i32
    %c0_i32_1 = arith.constant 0 : i32
    return %c0_i32, %c0_i32_0 : i32, i32
  }
  func.func @transform_2(%arg0: i32) -> (i32, i32) {
    %c0_i32 = arith.constant 0 : i32
    %c0_i32_0 = arith.constant 0 : i32
    %c0_i32_1 = arith.constant 0 : i32
    return %c0_i32, %c0_i32_0 : i32, i32
  }
  func.func @transform_3(%arg0: i32) -> (i32, i32) {
    %c0_i32 = arith.constant 0 : i32
    %c0_i32_0 = arith.constant 0 : i32
    %c0_i32_1 = arith.constant 0 : i32
    return %c0_i32, %c0_i32_0 : i32, i32
  }
  func.func @transform_4(%arg0: i32) -> (i32, i32) {
    %c0_i32 = arith.constant 0 : i32
    %c0_i32_0 = arith.constant 0 : i32
    %c0_i32_1 = arith.constant 0 : i32
    return %c0_i32, %c0_i32_0 : i32, i32
  }
  func.func @transform_5(%arg0: i32) -> (i32, i32) {
    %c0_i32 = arith.constant 0 : i32
    %c0_i32_0 = arith.constant 0 : i32
    %c0_i32_1 = arith.constant 0 : i32
    return %c0_i32, %c0_i32_0 : i32, i32
  }
  func.func @transform_6(%arg0: i32) -> (i32, i32) {
    %c0_i32 = arith.constant 0 : i32
    %c0_i32_0 = arith.constant 0 : i32
    %c0_i32_1 = arith.constant 0 : i32
    return %c0_i32, %c0_i32_0 : i32, i32
  }
  func.func @transform_7(%arg0: i32) -> (i32, i32) {
    %c0_i32 = arith.constant 0 : i32
    %c0_i32_0 = arith.constant 0 : i32
    %c0_i32_1 = arith.constant 0 : i32
    return %c0_i32, %c0_i32_0 : i32, i32
  }
  func.func @transform_8(%arg0: i32) -> (i32, i32) {
    %c0_i32 = arith.constant 0 : i32
    %c0_i32_0 = arith.constant 0 : i32
    %c0_i32_1 = arith.constant 0 : i32
    return %c0_i32, %c0_i32_0 : i32, i32
  }
  func.func @transform_9(%arg0: i32) -> (i32, i32) {
    %c0_i32 = arith.constant 0 : i32
    %c0_i32_0 = arith.constant 0 : i32
    %c0_i32_1 = arith.constant 0 : i32
    return %c0_i32, %c0_i32_0 : i32, i32
  }
}

</mosaic_0001>

<bundles_post_ra>
// kernel: tpu_custom_call.1
= control target key start
LH: loop header
LB: loop body
LE: loop exit
PB: predicated region body
PF: predicated region fallthrough
CT: control target
= control target key end

     0   :  { %15 = vsyncpa [#allocation3], 0  ;;  %s837_s0 = inlined_call_operand.hbm [shape: f32[2,128], index: 0, kind: input, shape index: {}]   ;;  %s838_s1 = inlined_call_operand.hbm [shape: f32[2,128], index: 1, kind: input, shape index: {}]   ;;  %s839_s2 = inlined_call_operand.hbm [shape: bf16[128,128], index: 2, kind: input, shape index: {}]   ;;  %s840_s3 = inlined_call_operand.vmem [shape: f32[1,128], index: 3, kind: input, shape index: {}]   ;;  %s841_s4 = inlined_call_operand.hbm [shape: bf16[128,128], index: 4, kind: input, shape index: {}]   ;;  %s842_s5 = inlined_call_operand.vmem [shape: f32[1,128], index: 5, kind: input, shape index: {}]   ;;  %s843_s6 = inlined_call_operand.hbm [shape: bf16[128,128], index: 6, kind: input, shape index: {}]   ;;  %s844_s7 = inlined_call_operand.vmem [shape: f32[1,128], index: 7, kind: input, shape index: {}]   ;;  %s845_s8 = inlined_call_operand.hbm [shape: f32[2,128], index: 8, kind: output, shape index: {0}]   ;;  %s846_s9 = inlined_call_operand.hbm [shape: f32[2,128], index: 9, kind: output, shape index: {1}]  }
   0x1   :  { %16 = vsyncpa [#allocation6], 0 }
   0x2   :  { %17 = vsyncpa [#allocation9], 0 }
   0x3   :  { %18 = vsyncpa [#allocation4], 0  ;;  %s36_s11 = sshll.u32 %s838_s1, 4  ;;  %s37_s11 = int_to_ptr.hbm [resolvable:$true] %s36_s11 }
   0x4   :  { %19 = vsyncpa [#allocation13], 0  ;;  %s748_s12 = smov [#allocation5]   ;;  %s61_s16 = sshll.u32 %s841_s4, 4  ;;  %s62_s16 = int_to_ptr.hbm [resolvable:$true] %s61_s16 }
   0x5   :  { %s38_s13 = sshll.u32 %s748_s12, 4  ;;  %s749_s17 = smov [#allocation8]   ;;  %s39_s13 = int_to_ptr.vmem [resolvable:$true] %s38_s13 }
   0x6   :  { %41 = dma.hbm_to_vmem [thread:$0]  %s37_s11, 32, %s39_s13, [#allocation6]  }
   0x7   :  { %s63_s18 = sshll.u32 %s749_s17, 4  ;;  %s25_s21 = sshll.u32 %s837_s0, 4  ;;  %s64_s18 = int_to_ptr.vmem [resolvable:$true] %s63_s18  ;;  %s26_s21 = int_to_ptr.hbm [resolvable:$true] %s25_s21 }
   0x8   :  { %s750_s1 = smov 64   ;;  %s751_s22 = smov 4  }
   0x9   :  { %69 = dma.hbm_to_vmem [thread:$0]  %s62_s16, 1024, %s64_s18, [#allocation9], %s750_s1, %s750_s1, %s751_s22  }
   0xa   :  { %s46_s25 = sshll.u32 %s839_s2, 4  ;;  %s752_s26 = smov [#allocation2]   ;;  %s47_s25 = int_to_ptr.hbm [resolvable:$true] %s46_s25 }
   0xb   :  { %s27_s27 = sshll.u32 %s752_s26, 4  ;;  %s753_s4 = smov [#allocation7]   ;;  %s28_s27 = int_to_ptr.vmem [resolvable:$true] %s27_s27 }
   0xc   :  { %30 = dma.hbm_to_vmem [thread:$0]  %s26_s21, 32, %s28_s27, [#allocation3]  }
   0xd   :  { %s48_s28 = sshll.u32 %s753_s4, 4  ;;  %s76_s0 = sshll.u32 %s843_s6, 4  ;;  %s49_s28 = int_to_ptr.vmem [resolvable:$true] %s48_s28  ;;  %s77_s0 = int_to_ptr.hbm [resolvable:$true] %s76_s0 }
   0xe   :  { %54 = dma.hbm_to_vmem [thread:$0]  %s47_s25, 1024, %s49_s28, [#allocation6], %s750_s1, %s750_s1, %s751_s22  }
   0xf   :  { %s754_s10 = smov [#allocation10]  }
  0x10   :  { %s78_s11 = sshll.u32 %s754_s10, 4  ;;  %s79_s11 = int_to_ptr.vmem [resolvable:$true] %s78_s11 }
  0x11   :  { %84 = dma.hbm_to_vmem [thread:$0]  %s77_s0, 1024, %s79_s11, [#allocation9], %s750_s1, %s750_s1, %s751_s22  }
  0x12   :  { %738 = dma.done.wait [#allocation3], 32  }
  0x13   :  { %739 = vsyncadd [#allocation3], 4294967264 }
  0x14   :  { %740 = dma.done.wait [#allocation6], 1056  }
  0x15   :  { %741 = vsyncadd [#allocation6], 4294966240 }
  0x16   :  { %742 = dma.done.wait [#allocation9], 2048  }
  0x17   :  { %743 = vsyncadd [#allocation9], 4294965248  ;;  %v541_v0 = vld [vmem:[#allocation7 + $0x38] sm:$0xff]  ;;  %v540_v1 = vld [vmem:[#allocation7 + $0x30] sm:$0xff]  ;;  %s755_s15 = smov [#allocation11]   ;;  %s410_s18 = sshll.u32 %s845_s8, 4  ;;  %s411_s18 = int_to_ptr.hbm [resolvable:$true] %s410_s18 }
  0x18   :  { %211 = vmatpush.bf16.msra.mxu0 %v541_v0  ;;  %359 = vmatpush.bf16.msra.mxu3 %v541_v0  ;;  %v549_v2 = vld [vmem:[#allocation8 + $0x38] sm:$0xff]  ;;  %v548_v3 = vld [vmem:[#allocation8 + $0x30] sm:$0xff]  ;;  %v539_v4 = vld [vmem:[#allocation7 + $0x28] sm:$0xff]  ;;  %s408_s16 = sshll.u32 %s755_s15, 4  ;;  %s756_s19 = smov [#allocation12]   ;;  %s409_s16 = int_to_ptr.vmem [resolvable:$true] %s408_s16 }
  0x19   :  { %277 = vmatpush.bf16.msra.mxu1 %v549_v2  ;;  %v547_v5 = vld [vmem:[#allocation8 + $0x28] sm:$0xff]  ;;  %v538_v6 = vld [vmem:[#allocation7 + $0x20] sm:$0xff]  ;;  %v537_v8 = vld [vmem:[#allocation7 + $0x18] sm:$0xff]  ;;  %s419_s20 = sshll.u32 %s756_s19, 4  ;;  %s421_s22 = sshll.u32 %s846_s9, 4  ;;  %s420_s20 = int_to_ptr.vmem [resolvable:$true] %s419_s20  ;;  %s422_s22 = int_to_ptr.hbm [resolvable:$true] %s421_s22 }
  0x1a   :  { %v546_v7 = vld [vmem:[#allocation8 + $0x20] sm:$0xff]  ;;  %v545_v9 = vld [vmem:[#allocation8 + $0x18] sm:$0xff]  ;;  %v536_v10 = vld [vmem:[#allocation7 + $0x10] sm:$0xff] }
  0x1b   :  { %v544_v11 = vld [vmem:[#allocation8 + $0x10] sm:$0xff]  ;;  %v535_v12 = vld [vmem:[#allocation7 + $0x8] sm:$0xff]  ;;  %v534_v13 = vld [vmem:[#allocation7] sm:$0xff] }
  0x1c   :  { %212 = vmatpush.bf16.msra.mxu0 %v540_v1  ;;  %360 = vmatpush.bf16.msra.mxu3 %v540_v1  ;;  %v158_v14 = vld [vmem:[#allocation2] sm:$0x3]  ;;  %v357_v15 = vld [vmem:[#allocation5] sm:$0x3]  ;;  %v543_v18 = vld [vmem:[#allocation8 + $0x8] sm:$0xff] }
  0x1d   :  { %278 = vmatpush.bf16.msra.mxu1 %v548_v3  ;;  %v159_v16 = vpack.c.bf16 %v158_v14, %v158_v14  ;;  %v358_v17 = vpack.c.bf16 %v357_v15, %v357_v15  ;;  %v542_v19 = vld [vmem:[#allocation8] sm:$0xff]  ;;  %v557_v20 = vld [vmem:[#allocation10 + $0x38] sm:$0xff]  ;;  %v556_v21 = vld [vmem:[#allocation10 + $0x30] sm:$0xff] }
  0x1e   :  { %343 = vmatpush.bf16.msra.mxu2 %v557_v20  ;;  %v555_v22 = vld [vmem:[#allocation10 + $0x28] sm:$0xff]  ;;  %v554_v23 = vld [vmem:[#allocation10 + $0x20] sm:$0xff]  ;;  %v553_v24 = vld [vmem:[#allocation10 + $0x18] sm:$0xff] }
  0x1f   :  { %v567_v25 = vld [vmem:[%s840_s3] ss:$0 sm:$0xff]  ;;  %v552_v27 = vld [vmem:[#allocation10 + $0x10] sm:$0xff]  ;;  %v551_v37 = vld [vmem:[#allocation10 + $0x8] sm:$0xff] }
  0x20   :  { %213 = vmatpush.bf16.msra.mxu0 %v539_v4  ;;  %361 = vmatpush.bf16.msra.mxu3 %v539_v4  ;;  %v550_v38 = vld [vmem:[#allocation10] sm:$0xff]  ;;  %v568_v39 = vld [vmem:[%s842_s5] ss:$0 sm:$0xff] }
  0x21   :  { %279 = vmatpush.bf16.msra.mxu1 %v547_v5  ;;  %v569_v50 = vld [vmem:[%s844_s7] ss:$0 sm:$0xff] }
  0x22   :  { %344 = vmatpush.bf16.msra.mxu2 %v556_v21 }
  0x24   :  { %214 = vmatpush.bf16.msra.mxu0 %v538_v6  ;;  %362 = vmatpush.bf16.msra.mxu3 %v538_v6 }
  0x25   :  { %280 = vmatpush.bf16.msra.mxu1 %v546_v7 }
  0x26   :  { %345 = vmatpush.bf16.msra.mxu2 %v555_v22 }
  0x28   :  { %215 = vmatpush.bf16.msra.mxu0 %v537_v8  ;;  %363 = vmatpush.bf16.msra.mxu3 %v537_v8 }
  0x29   :  { %281 = vmatpush.bf16.msra.mxu1 %v545_v9 }
  0x2a   :  { %346 = vmatpush.bf16.msra.mxu2 %v554_v23 }
  0x2c   :  { %216 = vmatpush.bf16.msra.mxu0 %v536_v10  ;;  %364 = vmatpush.bf16.msra.mxu3 %v536_v10 }
  0x2d   :  { %282 = vmatpush.bf16.msra.mxu1 %v544_v11 }
  0x2e   :  { %347 = vmatpush.bf16.msra.mxu2 %v553_v24 }
  0x30   :  { %217 = vmatpush.bf16.msra.mxu0 %v535_v12  ;;  %365 = vmatpush.bf16.msra.mxu3 %v535_v12 }
  0x31   :  { %283 = vmatpush.bf16.msra.mxu1 %v543_v18 }
  0x32   :  { %348 = vmatpush.bf16.msra.mxu2 %v552_v27 }
  0x34   :  { %218 = vmatpush.bf16.msra.mxu0 %v534_v13  ;;  %366 = vmatpush.bf16.msra.mxu3 %v534_v13 }
  0x35   :  { %284 = vmatpush.bf16.msra.mxu1 %v542_v19 }
  0x36   :  { %349 = vmatpush.bf16.msra.mxu2 %v551_v37 }
  0x37   :  { %219 = vmatmul.bf16.vlgmr.msra.gmra.mxu0 %v159_v16  ;;  %367 = vmatmul.bf16.vlgmr.msra.gmra.mxu3 %v358_v17 }
  0x38   :  { %374 = vmatpush.bf16.msrb.mxu0 %v549_v2 }
  0x39   :  { %389 = vmatpush.bf16.msrb.mxu1 %v557_v20 }
  0x3a   :  { %350 = vmatpush.bf16.msra.mxu2 %v550_v38 }
  0x3c   :  { %375 = vmatpush.bf16.msrb.mxu0 %v548_v3 }
  0x3d   :  { %390 = vmatpush.bf16.msrb.mxu1 %v556_v21 }
  0x40   :  { %376 = vmatpush.bf16.msrb.mxu0 %v547_v5 }
  0x41   :  { %391 = vmatpush.bf16.msrb.mxu1 %v555_v22 }
  0x44   :  { %377 = vmatpush.bf16.msrb.mxu0 %v546_v7 }
  0x45   :  { %392 = vmatpush.bf16.msrb.mxu1 %v554_v23 }
  0x48   :  { %378 = vmatpush.bf16.msrb.mxu0 %v545_v9 }
  0x49   :  { %393 = vmatpush.bf16.msrb.mxu1 %v553_v24 }
  0x4c   :  { %379 = vmatpush.bf16.msrb.mxu0 %v544_v11 }
  0x4d   :  { %394 = vmatpush.bf16.msrb.mxu1 %v552_v27 }
  0x50   :  { %380 = vmatpush.bf16.msrb.mxu0 %v543_v18 }
  0x51   :  { %395 = vmatpush.bf16.msrb.mxu1 %v551_v37 }
  0x54   :  { %381 = vmatpush.bf16.msrb.mxu0 %v542_v19 }
  0x55   :  { %396 = vmatpush.bf16.msrb.mxu1 %v550_v38 }
  0xb4   :  { %v220_v26 = vpop.f32.mrf.mxu0 }
  0xb5   :  { %v221_v28 = vadd.f32 %v567_v25, %v220_v26 }
  0xb7   :  { %v224_v29 = vmax.f32 %v221_v28, 0.0 }
  0xb9   :  { %v225_v30 = vpack.c.bf16 %v224_v29, %v224_v29 }
  0xba   :  { %v368_v31 = vpop.f32.mrf.mxu3 }
  0xbb   :  { %v369_v32 = vadd.f32 %v567_v25, %v368_v31  ;;  %285 = vmatmul.bf16.vlgmr.msra.gmra.mxu1 %v225_v30 }
  0xbc   :  { %v222_v33 = vpop.f32.mrf.mxu0 }
  0xbd   :  { %v372_v34 = vmax.f32 %v369_v32, 0.0 }
  0xbf   :  { %v373_v35 = vpack.c.bf16 %v372_v34, %v372_v34 }
  0xc1   :  { %382 = vmatmul.bf16.vlgmr.msrb.gmra.mxu0 %v373_v35 }
  0xc2   :  { %v370_v36 = vpop.f32.mrf.mxu3 }
 0x138   :  { %v286_v40 = vpop.f32.mrf.mxu1 }
 0x139   :  { %v287_v41 = vadd.f32 %v568_v39, %v286_v40 }
 0x13b   :  { %v290_v42 = vmax.f32 %v287_v41, 0.0 }
 0x13d   :  { %v291_v43 = vpack.c.bf16 %v290_v42, %v290_v42 }
 0x13e   :  { %v383_v44 = vpop.f32.mrf.mxu0 }
 0x13f   :  { %v384_v45 = vadd.f32 %v568_v39, %v383_v44  ;;  %351 = vmatmul.bf16.vlgmr.msra.gmra.mxu2 %v291_v43 }
 0x140   :  { %v288_v46 = vpop.f32.mrf.mxu1 }
 0x141   :  { %v387_v47 = vmax.f32 %v384_v45, 0.0 }
 0x143   :  { %v388_v48 = vpack.c.bf16 %v387_v47, %v387_v47 }
 0x145   :  { %397 = vmatmul.bf16.vlgmr.msrb.gmra.mxu1 %v388_v48 }
 0x146   :  { %v385_v49 = vpop.f32.mrf.mxu0 }
 0x1c2   :  { %v352_v51 = vpop.f32.mrf.mxu2  ;;  %v398_v52 = vpop.f32.mrf.mxu1 }
 0x1c3   :  { %v353_v53 = vadd.f32 %v569_v50, %v352_v51  ;;  %v399_v54 = vadd.f32 %v569_v50, %v398_v52 }
 0x1c5   :  { %356 = vst [vmem:[#allocation11] sm:$0x3] %v353_v53 }
 0x1c6   :  { %402 = vst [vmem:[#allocation12] sm:$0x3] %v399_v54  ;;  %413 = dma.vmem_to_hbm [thread:$0]  %s409_s16, 32, %s411_s18, [#allocation4]  }
 0x1c7   :  { %424 = dma.vmem_to_hbm [thread:$0]  %s420_s20, 32, %s422_s22, [#allocation13]  }
 0x1ca   :  { %v354_v55 = vpop.f32.mrf.mxu2  ;;  %v400_v56 = vpop.f32.mrf.mxu1 }
 0x1cb   :  { %744 = dma.done.wait [#allocation4], 32  }
 0x1cc   :  { %745 = vsyncadd [#allocation4], 4294967264 }
 0x1cd   :  { %746 = dma.done.wait [#allocation13], 32  }
 0x1ce   :  { %747 = vsyncadd [#allocation13], 4294967264 }
 0x1cf   :  { %433 = vsyncpa [#allocation3], 1 }
 0x1d0   :  { %434 = vsyncpa [#allocation6], 1 }
 0x1d1   :  { %435 = vsyncpa [#allocation9], 1 }
 0x1d2   :  { %436 = vsyncpa [#allocation4], 1 }
 0x1d3   :  { %437 = vsyncpa [#allocation13], 1 }

</bundles_post_ra>
